<compile_context>
chip_gen: v7x
topology: tpu7x:2x2x1
jax: 0.10.0
libtpu: 0.0.40
codegen_flags: <defaults>
</compile_context>

<pallas_src>
import numpy as np
import jax
import jax.numpy as jnp
from jax.experimental import pallas as pl
from jax.experimental.pallas import tpu as pltpu


def _pinn_mlp_kernel(w0_ref, b0_ref, w1_ref, b1_ref,
                     w2_ref, b2_ref, w3_ref, b3_ref,
                     x_ref, o_ref):
    x = x_ref[...]                           # (TB, 2) f32

    # Layer 0 (in_features = 2): K=2 is too shallow for the MXU -> do it as
    # two VPU broadcast-FMAs. Normalization + a1 are already folded into
    # w0/b0 by the wrapper, so no divide / no extra scale multiply here.
    h1 = x[:, 0:1] * w0_ref[0:1, :] + x[:, 1:2] * w0_ref[1:2, :] + b0_ref[...]
    out1 = jnp.tanh(h1)

    # Hidden layers: NN x NN matmuls on the MXU; a2/a3 folded into w1/b1, w2/b2.
    h2 = jnp.dot(out1, w1_ref[...], preferred_element_type=jnp.float32) + b1_ref[...]
    out2 = jnp.tanh(h2)

    h3 = jnp.dot(out2, w2_ref[...], preferred_element_type=jnp.float32) + b2_ref[...]
    out3 = jnp.tanh(h3)

    o_ref[...] = (jnp.dot(out3, w3_ref[...], preferred_element_type=jnp.float32)
                  + b3_ref[...]).astype(o_ref.dtype)


def pinn_net_forward(x, params, lb, ub, *, tile_b=None):
    """Pallas forward pass of the Schrodinger PINN `Net` module.

    x      : (B, 2) float32
    params : dict with w0 (2,NN), b0 (1,NN), w1 (NN,NN), b1 (1,NN),
             w2 (NN,NN), b2 (1,NN), w3 (NN,2), b3 (1,2), a (3,)
    lb, ub : (1, 2) float32 domain bounds
    returns: (B, 2) float32
    """
    B = x.shape[0]
    NN = params["w0"].shape[1]

    if tile_b is None:
        # Weights are only ~33 KB; activations are tile_b*NN*4 B. Use the
        # largest tile that divides B (single grid step for small B), capped
        # at 1024 rows so VMEM stays far below the scoped limit on all chips.
        if B <= 1024:
            tile_b = B
        else:
            tile_b = max(t for t in (1024, 512, 256, 128, 64, 8) if B % t == 0)
    assert B % tile_b == 0, "batch must be divisible by tile_b (pad if needed)"

    # Fold the input normalization (lb/ub) and the adaptive slopes a1/a2/a3
    # into the weights/biases once, outside the kernel (trivial XLA op):
    #   x1 = x*scale + shift,  tanh(a*(x1@W+b)) == tanh(x@(a*scale.T*W) + a*(shift@W+b))
    a1, a2, a3 = params["a"][0], params["a"][1], params["a"][2]
    scale = 2.0 / (ub - lb)                   # (1, 2)
    shift = -2.0 * lb / (ub - lb) - 1.0       # (1, 2)
    w0 = (a1 * scale.T) * params["w0"]        # (2, NN)
    b0 = a1 * (shift @ params["w0"] + params["b0"])
    w1 = a2 * params["w1"]
    b1 = a2 * params["b1"]
    w2 = a3 * params["w2"]
    b2 = a3 * params["b2"]
    w3 = params["w3"]
    b3 = params["b3"]

    full = lambda shape: pl.BlockSpec(shape, lambda i: (0, 0))

    grid_spec = pltpu.PrefetchScalarGridSpec(
        num_scalar_prefetch=0,
        grid=(B // tile_b,),
        in_specs=[
            full((2, NN)),                                       # w0 (folded)
            full((1, NN)),                                       # b0 (folded)
            full((NN, NN)),                                      # w1 (folded)
            full((1, NN)),                                       # b1 (folded)
            full((NN, NN)),                                      # w2 (folded)
            full((1, NN)),                                       # b2 (folded)
            full((NN, 2)),                                       # w3
            full((1, 2)),                                        # b3
            pl.BlockSpec((tile_b, 2), lambda i: (i, 0)),         # x
        ],
        out_specs=pl.BlockSpec((tile_b, 2), lambda i: (i, 0)),
    )

    # TODO(synk): at PINN-training batch sizes (B >= 10k) present x / out as
    # (2, B) (wrapper transpose) for lane-dense unmasked stores, and keep a
    # multi-step "parallel" grid so v7x's second TensorCore is used.
    return pl.pallas_call(
        _pinn_mlp_kernel,
        out_shape=jax.ShapeDtypeStruct((B, 2), jnp.float32),
        grid_spec=grid_spec,
        compiler_params=pltpu.CompilerParams(
            dimension_semantics=("parallel",)),
    )(w0, b0, w1, b1, w2, b2, w3, b3, x)


def _ref_forward(x, params, lb, ub):
    """Pure-JAX reference matching the PyTorch forward exactly."""
    a1, a2, a3 = params["a"][0], params["a"][1], params["a"][2]
    x1 = 2.0 * (x - lb) / (ub - lb) - 1.0
    out1 = jnp.tanh(a1 * (x1 @ params["w0"] + params["b0"]))
    out2 = jnp.tanh(a2 * (out1 @ params["w1"] + params["b1"]))
    out3 = jnp.tanh(a3 * (out2 @ params["w2"] + params["b2"]))
    return out3 @ params["w3"] + params["b3"]


if __name__ == "__main__":
    NN = 64      # hidden width
    B = 128      # number of (x, t) collocation points

    key = jax.random.PRNGKey(0)
    ks = jax.random.split(key, 10)

    def linear_init(kw, kb, fan_in, fan_out):
        # PyTorch nn.Linear default init: U(-1/sqrt(fan_in), 1/sqrt(fan_in))
        bound = 1.0 / np.sqrt(fan_in)
        w = jax.random.uniform(kw, (fan_in, fan_out), jnp.float32, -bound, bound)
        b = jax.random.uniform(kb, (1, fan_out), jnp.float32, -bound, bound)
        return w, b

    w0, b0 = linear_init(ks[0], ks[1], 2, NN)
    w1, b1 = linear_init(ks[2], ks[3], NN, NN)
    w2, b2 = linear_init(ks[4], ks[5], NN, NN)
    w3, b3 = linear_init(ks[6], ks[7], NN, 2)

    params = dict(
        w0=w0, b0=b0, w1=w1, b1=b1, w2=w2, b2=b2, w3=w3, b3=b3,
        a=jnp.ones((3,), jnp.float32),   # a1, a2, a3 initialized to 1.0
    )

    # Schrodinger domain bounds: x in [-5, 5], t in [0, pi/2]
    lb = jnp.array([[-5.0, 0.0]], dtype=jnp.float32)
    ub = jnp.array([[5.0, np.pi / 2]], dtype=jnp.float32)

    # Input points in the domain
    u = jax.random.uniform(ks[8], (B, 2), jnp.float32)
    x = lb + (ub - lb) * u

    out = pinn_net_forward(x, params, lb, ub)     # tile_b=B -> single grid step
    out = jax.block_until_ready(out)

    ref = _ref_forward(x, params, lb, ub)
    np.testing.assert_allclose(np.asarray(out), np.asarray(ref),
                               rtol=1e-5, atol=1e-5)

    print("KERNEL_OK")
</pallas_src>

<mosaic_0001>
module attributes {stable_mosaic.version = 11 : i64} {
  func.func @_pinn_mlp_kernel(%arg0: i32, %arg1: memref<2x64xf32, #tpu.memory_space<vmem>>, %arg2: memref<1x64xf32, #tpu.memory_space<vmem>>, %arg3: memref<64x64xf32, #tpu.memory_space<vmem>>, %arg4: memref<1x64xf32, #tpu.memory_space<vmem>>, %arg5: memref<64x64xf32, #tpu.memory_space<vmem>>, %arg6: memref<1x64xf32, #tpu.memory_space<vmem>>, %arg7: memref<64x2xf32, #tpu.memory_space<vmem>>, %arg8: memref<1x2xf32, #tpu.memory_space<vmem>>, %arg9: memref<128x2xf32, #tpu.memory_space<vmem>>, %arg10: memref<128x2xf32, #tpu.memory_space<vmem>>) attributes {dimension_semantics = [#tpu.dimension_semantics<parallel>], iteration_bounds = array<i64: 1>, scalar_prefetch = 0 : i64, scratch_operands = 0 : i64, tpu.core_type = #tpu.core_type<tc>, window_params = [{pipeline_mode = #tpu.pipeline_mode<synchronous>, transform_indices = @transform_0, window_bounds = array<i64: 2, 64>}, {pipeline_mode = #tpu.pipeline_mode<synchronous>, transform_indices = @transform_1, window_bounds = array<i64: 1, 64>}, {pipeline_mode = #tpu.pipeline_mode<synchronous>, transform_indices = @transform_2, window_bounds = array<i64: 64, 64>}, {pipeline_mode = #tpu.pipeline_mode<synchronous>, transform_indices = @transform_3, window_bounds = array<i64: 1, 64>}, {pipeline_mode = #tpu.pipeline_mode<synchronous>, transform_indices = @transform_4, window_bounds = array<i64: 64, 64>}, {pipeline_mode = #tpu.pipeline_mode<synchronous>, transform_indices = @transform_5, window_bounds = array<i64: 1, 64>}, {pipeline_mode = #tpu.pipeline_mode<synchronous>, transform_indices = @transform_6, window_bounds = array<i64: 64, 2>}, {pipeline_mode = #tpu.pipeline_mode<synchronous>, transform_indices = @transform_7, window_bounds = array<i64: 1, 2>}, {transform_indices = @transform_8, window_bounds = array<i64: 128, 2>}, {transform_indices = @transform_9, window_bounds = array<i64: 128, 2>}]} {
    %c0 = arith.constant 0 : index
    %c0_0 = arith.constant 0 : index
    %0 = vector.load %arg9[%c0, %c0_0] : memref<128x2xf32, #tpu.memory_space<vmem>>, vector<128x2xf32>
    %1 = vector.extract_strided_slice %0 {offsets = [0, 0], sizes = [128, 1], strides = [1, 1]} : vector<128x2xf32> to vector<128x1xf32>
    %c0_1 = arith.constant 0 : index
    %c0_2 = arith.constant 0 : index
    %2 = vector.load %arg1[%c0_1, %c0_2] : memref<2x64xf32, #tpu.memory_space<vmem>>, vector<1x64xf32>
    %3 = vector.broadcast %1 : vector<128x1xf32> to vector<128x64xf32>
    %4 = vector.broadcast %2 : vector<1x64xf32> to vector<128x64xf32>
    %5 = arith.mulf %3, %4 : vector<128x64xf32>
    %6 = vector.extract_strided_slice %0 {offsets = [0, 1], sizes = [128, 1], strides = [1, 1]} : vector<128x2xf32> to vector<128x1xf32>
    %c1 = arith.constant 1 : index
    %c0_3 = arith.constant 0 : index
    %7 = vector.load %arg1[%c1, %c0_3] : memref<2x64xf32, #tpu.memory_space<vmem>>, vector<1x64xf32>
    %8 = vector.broadcast %6 : vector<128x1xf32> to vector<128x64xf32>
    %9 = vector.broadcast %7 : vector<1x64xf32> to vector<128x64xf32>
    %10 = arith.mulf %8, %9 : vector<128x64xf32>
    %11 = arith.addf %5, %10 : vector<128x64xf32>
    %c0_4 = arith.constant 0 : index
    %c0_5 = arith.constant 0 : index
    %12 = vector.load %arg2[%c0_4, %c0_5] : memref<1x64xf32, #tpu.memory_space<vmem>>, vector<1x64xf32>
    %13 = vector.broadcast %12 : vector<1x64xf32> to vector<128x64xf32>
    %14 = arith.addf %11, %13 : vector<128x64xf32>
    %15 = math.tanh %14 : vector<128x64xf32>
    %c0_6 = arith.constant 0 : index
    %c0_7 = arith.constant 0 : index
    %16 = vector.load %arg3[%c0_6, %c0_7] : memref<64x64xf32, #tpu.memory_space<vmem>>, vector<64x64xf32>
    %cst = arith.constant dense<0.000000e+00> : vector<128x64xf32>
    %17 = tpu.matmul %15, %16, %cst {dimension_numbers = #tpu.dot_dimension_numbers<[1], [0], [0], [1], [0, 0, 1, 1], [], []>} : vector<128x64xf32>, vector<64x64xf32>, vector<128x64xf32> -> vector<128x64xf32>
    %c0_8 = arith.constant 0 : index
    %c0_9 = arith.constant 0 : index
    %18 = vector.load %arg4[%c0_8, %c0_9] : memref<1x64xf32, #tpu.memory_space<vmem>>, vector<1x64xf32>
    %19 = vector.broadcast %18 : vector<1x64xf32> to vector<128x64xf32>
    %20 = arith.addf %17, %19 : vector<128x64xf32>
    %21 = math.tanh %20 : vector<128x64xf32>
    %c0_10 = arith.constant 0 : index
    %c0_11 = arith.constant 0 : index
    %22 = vector.load %arg5[%c0_10, %c0_11] : memref<64x64xf32, #tpu.memory_space<vmem>>, vector<64x64xf32>
    %cst_12 = arith.constant dense<0.000000e+00> : vector<128x64xf32>
    %23 = tpu.matmul %21, %22, %cst_12 {dimension_numbers = #tpu.dot_dimension_numbers<[1], [0], [0], [1], [0, 0, 1, 1], [], []>} : vector<128x64xf32>, vector<64x64xf32>, vector<128x64xf32> -> vector<128x64xf32>
    %c0_13 = arith.constant 0 : index
    %c0_14 = arith.constant 0 : index
    %24 = vector.load %arg6[%c0_13, %c0_14] : memref<1x64xf32, #tpu.memory_space<vmem>>, vector<1x64xf32>
    %25 = vector.broadcast %24 : vector<1x64xf32> to vector<128x64xf32>
    %26 = arith.addf %23, %25 : vector<128x64xf32>
    %27 = math.tanh %26 : vector<128x64xf32>
    %c0_15 = arith.constant 0 : index
    %c0_16 = arith.constant 0 : index
    %28 = vector.load %arg7[%c0_15, %c0_16] : memref<64x2xf32, #tpu.memory_space<vmem>>, vector<64x2xf32>
    %cst_17 = arith.constant dense<0.000000e+00> : vector<128x2xf32>
    %29 = tpu.matmul %27, %28, %cst_17 {dimension_numbers = #tpu.dot_dimension_numbers<[1], [0], [0], [1], [0, 0, 1, 1], [], []>} : vector<128x64xf32>, vector<64x2xf32>, vector<128x2xf32> -> vector<128x2xf32>
    %c0_18 = arith.constant 0 : index
    %c0_19 = arith.constant 0 : index
    %30 = vector.load %arg8[%c0_18, %c0_19] : memref<1x2xf32, #tpu.memory_space<vmem>>, vector<1x2xf32>
    %31 = vector.broadcast %30 : vector<1x2xf32> to vector<128x2xf32>
    %32 = arith.addf %29, %31 : vector<128x2xf32>
    %c0_20 = arith.constant 0 : index
    %c0_21 = arith.constant 0 : index
    %33 = vector.load %arg10[%c0_20, %c0_21] : memref<128x2xf32, #tpu.memory_space<vmem>>, vector<128x2xf32>
    tpu.vector_store %arg10[%c0_20, %c0_21], %32 {strides = array<i32>} : memref<128x2xf32, #tpu.memory_space<vmem>>, vector<128x2xf32>,
    return
  }
  func.func @transform_0(%arg0: i32) -> (i32, i32) {
    %c0_i32 = arith.constant 0 : i32
    %c0_i32_0 = arith.constant 0 : i32
    %c0_i32_1 = arith.constant 0 : i32
    return %c0_i32, %c0_i32_0 : i32, i32
  }
  func.func @transform_1(%arg0: i32) -> (i32, i32) {
    %c0_i32 = arith.constant 0 : i32
    %c0_i32_0 = arith.constant 0 : i32
    %c0_i32_1 = arith.constant 0 : i32
    return %c0_i32, %c0_i32_0 : i32, i32
  }
  func.func @transform_2(%arg0: i32) -> (i32, i32) {
    %c0_i32 = arith.constant 0 : i32
    %c0_i32_0 = arith.constant 0 : i32
    %c0_i32_1 = arith.constant 0 : i32
    return %c0_i32, %c0_i32_0 : i32, i32
  }
  func.func @transform_3(%arg0: i32) -> (i32, i32) {
    %c0_i32 = arith.constant 0 : i32
    %c0_i32_0 = arith.constant 0 : i32
    %c0_i32_1 = arith.constant 0 : i32
    return %c0_i32, %c0_i32_0 : i32, i32
  }
  func.func @transform_4(%arg0: i32) -> (i32, i32) {
    %c0_i32 = arith.constant 0 : i32
    %c0_i32_0 = arith.constant 0 : i32
    %c0_i32_1 = arith.constant 0 : i32
    return %c0_i32, %c0_i32_0 : i32, i32
  }
  func.func @transform_5(%arg0: i32) -> (i32, i32) {
    %c0_i32 = arith.constant 0 : i32
    %c0_i32_0 = arith.constant 0 : i32
    %c0_i32_1 = arith.constant 0 : i32
    return %c0_i32, %c0_i32_0 : i32, i32
  }
  func.func @transform_6(%arg0: i32) -> (i32, i32) {
    %c0_i32 = arith.constant 0 : i32
    %c0_i32_0 = arith.constant 0 : i32
    %c0_i32_1 = arith.constant 0 : i32
    return %c0_i32, %c0_i32_0 : i32, i32
  }
  func.func @transform_7(%arg0: i32) -> (i32, i32) {
    %c0_i32 = arith.constant 0 : i32
    %c0_i32_0 = arith.constant 0 : i32
    %c0_i32_1 = arith.constant 0 : i32
    return %c0_i32, %c0_i32_0 : i32, i32
  }
  func.func @transform_8(%arg0: i32) -> (i32, i32) {
    %c0_i32 = arith.constant 0 : i32
    %c0_i32_0 = arith.constant 0 : i32
    return %arg0, %c0_i32 : i32, i32
  }
  func.func @transform_9(%arg0: i32) -> (i32, i32) {
    %c0_i32 = arith.constant 0 : i32
    %c0_i32_0 = arith.constant 0 : i32
    return %arg0, %c0_i32 : i32, i32
  }
}

</mosaic_0001>

<bundles_post_ra>
// kernel: tpu_custom_call.1
= control target key start
LH: loop header
LB: loop body
LE: loop exit
PB: predicated region body
PF: predicated region fallthrough
CT: control target
= control target key end

     0   :  { %v1372_v0 = vmov 0   ;;  %v1373_v3 = vmov 1   ;;  %vm304_vm0 = vcmask 523264   ;;  %vm946_vm1 = vcmask 15360   ;;  %s1764_s8 = inlined_call_operand.vmem [shape: f32[128,2], index: 8, kind: input, shape index: {}]   ;;  %s1765_s2 = inlined_call_operand.vmem [shape: f32[64,64], index: 2, kind: input, shape index: {}]   ;;  %s1766_s0 = inlined_call_operand.vmem [shape: f32[2,64], index: 0, kind: input, shape index: {}]   ;;  %s1767_s1 = inlined_call_operand.vmem [shape: f32[1,64], index: 1, kind: input, shape index: {}]   ;;  %s1768_s4 = inlined_call_operand.vmem [shape: f32[64,64], index: 4, kind: input, shape index: {}]   ;;  %s1769_s3 = inlined_call_operand.vmem [shape: f32[1,64], index: 3, kind: input, shape index: {}]   ;;  %s1770_s6 = inlined_call_operand.vmem [shape: f32[64,2], index: 6, kind: input, shape index: {}]   ;;  %s1771_s5 = inlined_call_operand.vmem [shape: f32[1,64], index: 5, kind: input, shape index: {}]   ;;  %s1772_s7 = inlined_call_operand.vmem [shape: f32[1,2], index: 7, kind: input, shape index: {}]   ;;  %s1773_s9 = inlined_call_operand.vmem [shape: f32[128,2], index: 9, kind: output, shape index: {}]  }
   0x1   :  { %1273 = vset.pattern.permute.xlu1 %v1372_v0  ;;  %1271 = vset.pattern.permute.xlu0 %v1372_v0  ;;  %v33_v1 = vld [vmem:[%s1764_s8 + $0x8] sm:$0xff]  ;;  %v32_v2 = vld [vmem:[%s1764_s8] sm:$0xff]  ;;  %v34_v6 = vld [vmem:[%s1764_s8 + $0x10] sm:$0xff] }
   0x2   :  { %56 = vperm.xlu1 %1273, %v33_v1   ;;  %51 = vperm.xlu0 %1271, %v32_v2   ;;  %v289_v4 = vld [vmem:[%s1765_s2] sm:$0xff]  ;;  %v290_v5 = vld [vmem:[%s1765_s2 + $0x8] sm:$0xff]  ;;  %v291_v8 = vld [vmem:[%s1765_s2 + $0x10] sm:$0xff] }
   0x3   :  { %v1213_v7 = vpack.c.bf16 %v290_v5, %v289_v4  ;;  %v292_v9 = vld [vmem:[%s1765_s2 + $0x18] sm:$0xff]  ;;  %v293_v12 = vld [vmem:[%s1765_s2 + $0x20] sm:$0xff]  ;;  %v294_v13 = vld [vmem:[%s1765_s2 + $0x28] sm:$0xff] }
   0x4   :  { %v35_v10 = vld [vmem:[%s1764_s8 + $0x18] sm:$0xff]  ;;  %v1217_v11 = vpack.c.bf16 %v292_v9, %v291_v8  ;;  %v36_v14 = vld [vmem:[%s1764_s8 + $0x20] sm:$0xff]  ;;  %v1221_v15 = vpack.c.bf16 %v294_v13, %v293_v12  ;;  %v295_v16 = vld [vmem:[%s1765_s2 + $0x30] sm:$0xff] }
   0x5   :  { %1214 = vmatprep.subr.bf16.mxu0 %v1213_v7  ;;  %1261 = vmatprep.subr.bf16.mxu1 %v1213_v7  ;;  %v296_v17 = vld [vmem:[%s1765_s2 + $0x38] sm:$0xff]  ;;  %v37_v18 = vld [vmem:[%s1764_s8 + $0x28] sm:$0xff]  ;;  %v38_v20 = vld [vmem:[%s1764_s8 + $0x30] sm:$0xff] }
   0x6   :  { %1274 = vset.pattern.permute.xlu1 %v1373_v3  ;;  %1272 = vset.pattern.permute.xlu0 %v1373_v3  ;;  %v1225_v19 = vpack.c.bf16 %v296_v17, %v295_v16  ;;  %v39_v21 = vld [vmem:[%s1764_s8 + $0x38] sm:$0xff]  ;;  %v40_v22 = vld [vmem:[%s1764_s8 + $0x40] sm:$0xff]  ;;  %v41_v23 = vld [vmem:[%s1764_s8 + $0x48] sm:$0xff] }
   0x7   :  { %155 = vperm.xlu1 %1274, %v33_v1   ;;  %151 = vperm.xlu0 %1272, %v32_v2   ;;  %v42_v24 = vld [vmem:[%s1764_s8 + $0x50] sm:$0xff]  ;;  %v43_v25 = vld [vmem:[%s1764_s8 + $0x58] sm:$0xff]  ;;  %v44_v26 = vld [vmem:[%s1764_s8 + $0x60] sm:$0xff] }
   0x8   :  { %1216 = vmatpush3.bf16.msra.mxu0 %v1213_v7  ;;  %1265 = vmatpush3.bf16.msra.mxu1 %v1213_v7  ;;  %v45_v27 = vld [vmem:[%s1764_s8 + $0x68] sm:$0xff]  ;;  %v46_v28 = vld [vmem:[%s1764_s8 + $0x70] sm:$0xff]  ;;  %v47_v29 = vld [vmem:[%s1764_s8 + $0x78] sm:$0xff] }
   0x9   :  { %1218 = vmatprep.subr.bf16.mxu0 %v1217_v11  ;;  %1262 = vmatprep.subr.bf16.mxu1 %v1217_v11  ;;  %v1499_v32 = vld [vmem:[%s1766_s0] ss:$0 sm:$0xff]  ;;  %v1504_v33 = vld [vmem:[%s1766_s0 + $0x1] ss:$0 sm:$0xff] }
   0xa   :  { %v1513_v40 = vld [vmem:[%s1767_s1] ss:$0 sm:$0xff] }
   0xb   :  { %1275 = vset.pattern.permute.xlu1 %v1372_v0  ;;  %159 = vperm.xlu0 %1272, %v34_v6  }
   0xc   :  { %61 = vperm.xlu1 %1275, %v34_v6   ;;  %1220 = vmatpush3.bf16.msra.mxu0 %v1217_v11 }
   0xd   :  { %1266 = vmatpush3.bf16.msra.mxu1 %v1217_v11  ;;  %1222 = vmatprep.subr.bf16.mxu0 %v1221_v15 }
   0xe   :  { %1263 = vmatprep.subr.bf16.mxu1 %v1221_v15 }
   0xf   :  { %163 = vperm.xlu0 %1272, %v35_v10  }
  0x10   :  { %66 = vperm.xlu1 %1275, %v35_v10   ;;  %1224 = vmatpush3.bf16.msra.mxu0 %v1221_v15 }
  0x11   :  { %1267 = vmatpush3.bf16.msra.mxu1 %v1221_v15  ;;  %1226 = vmatprep.subr.bf16.mxu0 %v1225_v19 }
  0x12   :  { %1264 = vmatprep.subr.bf16.mxu1 %v1225_v19 }
  0x13   :  { %167 = vperm.xlu0 %1272, %v36_v14  }
  0x14   :  { %71 = vperm.xlu1 %1275, %v36_v14   ;;  %1228 = vmatpush3.bf16.msra.mxu0 %v1225_v19 }
  0x15   :  { %1268 = vmatpush3.bf16.msra.mxu1 %v1225_v19 }
  0x17   :  { %171 = vperm.xlu0 %1272, %v37_v18  }
  0x18   :  { %76 = vperm.xlu1 %1275, %v37_v18  }
  0x1b   :  { %175 = vperm.xlu0 %1272, %v38_v20  }
  0x1c   :  { %81 = vperm.xlu1 %1275, %v38_v20  }
  0x1f   :  { %179 = vperm.xlu0 %1272, %v39_v21  }
  0x20   :  { %86 = vperm.xlu1 %1275, %v39_v21  }
  0x23   :  { %183 = vperm.xlu0 %1272, %v40_v22  }
  0x24   :  { %91 = vperm.xlu1 %1275, %v40_v22  }
  0x27   :  { %187 = vperm.xlu0 %1272, %v41_v23  }
  0x28   :  { %96 = vperm.xlu1 %1275, %v41_v23  }
  0x2b   :  { %191 = vperm.xlu0 %1272, %v42_v24  }
  0x2c   :  { %101 = vperm.xlu1 %1275, %v42_v24  }
  0x2f   :  { %195 = vperm.xlu0 %1272, %v43_v25  }
  0x30   :  { %106 = vperm.xlu1 %1275, %v43_v25  }
  0x33   :  { %199 = vperm.xlu0 %1272, %v44_v26  }
  0x34   :  { %111 = vperm.xlu1 %1275, %v44_v26  }
  0x37   :  { %203 = vperm.xlu0 %1272, %v45_v27  }
  0x38   :  { %116 = vperm.xlu1 %1275, %v45_v27  }
  0x3b   :  { %207 = vperm.xlu0 %1272, %v46_v28  }
  0x3c   :  { %121 = vperm.xlu1 %1275, %v46_v28  }
  0x3f   :  { %211 = vperm.xlu0 %1272, %v47_v29  }
  0x40   :  { %126 = vperm.xlu1 %1275, %v47_v29  }
  0x81   :  { %v57_v30 = vpop.permute.xlu1 %56  ;;  %v52_v31 = vpop.permute.xlu0 %51 }
  0x82   :  { %v134_v36 = vmul.f32 %v1499_v32, %v57_v30  ;;  %v133_v37 = vmul.f32 %v1499_v32, %v52_v31 }
  0x86   :  { %v156_v34 = vpop.permute.xlu1 %155  ;;  %v152_v35 = vpop.permute.xlu0 %151 }
  0x87   :  { %v219_v38 = vmul.f32 %v1504_v33, %v156_v34  ;;  %v218_v39 = vmul.f32 %v1504_v33, %v152_v35 }
  0x89   :  { %v235_v41 = vadd.f32 %v219_v38, %v134_v36  ;;  %v234_v42 = vadd.f32 %v218_v39, %v133_v37 }
  0x8a   :  { %v160_v43 = vpop.permute.xlu0 %159 }
  0x8b   :  { %v258_v44 = vadd.f32 %v1513_v40, %v235_v41  ;;  %v257_v45 = vadd.f32 %v1513_v40, %v234_v42  ;;  %v220_v46 = vmul.f32 %v1504_v33, %v160_v43  ;;  %v62_v47 = vpop.permute.xlu1 %61 }
  0x8c   :  { %v135_v48 = vmul.f32 %v1499_v32, %v62_v47 }
  0x8d   :  { %1276 = vtanh.f32 %v258_v44 }
  0x8e   :  { %1278 = vtanh.f32 %v257_v45  ;;  %v236_v49 = vadd.f32 %v220_v46, %v135_v48  ;;  %v164_v50 = vpop.permute.xlu0 %163 }
  0x8f   :  { %v221_v51 = vmul.f32 %v1504_v33, %v164_v50  ;;  %v67_v52 = vpop.permute.xlu1 %66 }
  0x90   :  { %v259_v53 = vadd.f32 %v1513_v40, %v236_v49  ;;  %v136_v54 = vmul.f32 %v1499_v32, %v67_v52 }
  0x92   :  { %1280 = vtanh.f32 %v259_v53  ;;  %v237_v55 = vadd.f32 %v221_v51, %v136_v54  ;;  %v168_v56 = vpop.permute.xlu0 %167 }
  0x93   :  { %v222_v57 = vmul.f32 %v1504_v33, %v168_v56  ;;  %v72_v58 = vpop.permute.xlu1 %71 }
  0x94   :  { %v260_v59 = vadd.f32 %v1513_v40, %v237_v55  ;;  %v137_v60 = vmul.f32 %v1499_v32, %v72_v58 }
  0x96   :  { %1282 = vtanh.f32 %v260_v59  ;;  %v238_v61 = vadd.f32 %v222_v57, %v137_v60  ;;  %v172_v62 = vpop.permute.xlu0 %171 }
  0x97   :  { %v1277_v63 = vpop.eup %1276  ;;  %v223_v0 = vmul.f32 %v1504_v33, %v172_v62  ;;  %v77_v1 = vpop.permute.xlu1 %76 }
  0x98   :  { %v1279_v2 = vpop.eup %1278  ;;  %v261_v3 = vadd.f32 %v1513_v40, %v238_v61  ;;  %v138_v4 = vmul.f32 %v1499_v32, %v77_v1 }
  0x99   :  { %1109 = vmatprep.mubr.msk.f32.mxu0 %vm304_vm0, %v1279_v2 }
  0x9a   :  { %1284 = vtanh.f32 %v261_v3  ;;  %v239_v5 = vadd.f32 %v223_v0, %v138_v4  ;;  %1110 = vmatmul.mubr.msk.f32.vlgmr.msra.gmra.mrb[0].mxu0 %vm304_vm0, %v1277_v63  ;;  %v176_v6 = vpop.permute.xlu0 %175 }
  0x9b   :  { %v224_v7 = vmul.f32 %v1504_v33, %v176_v6  ;;  %v82_v8 = vpop.permute.xlu1 %81 }
  0x9c   :  { %v1281_v9 = vpop.eup %1280  ;;  %v262_v10 = vadd.f32 %v1513_v40, %v239_v5  ;;  %v139_v11 = vmul.f32 %v1499_v32, %v82_v8 }
  0x9d   :  { %1112 = vmatprep.mubr.msk.f32.mxu0 %vm304_vm0, %v1281_v9 }
  0x9e   :  { %1286 = vtanh.f32 %v262_v10  ;;  %v240_v12 = vadd.f32 %v224_v7, %v139_v11  ;;  %v180_v13 = vpop.permute.xlu0 %179 }
  0x9f   :  { %v225_v14 = vmul.f32 %v1504_v33, %v180_v13  ;;  %v87_v15 = vpop.permute.xlu1 %86 }
  0xa0   :  { %v1283_v16 = vpop.eup %1282  ;;  %v263_v17 = vadd.f32 %v1513_v40, %v240_v12  ;;  %v140_v18 = vmul.f32 %v1499_v32, %v87_v15 }
  0xa1   :  { %1113 = vmatmul.mubr.msk.f32.gmra.mrb[2].mxu0 %vm304_vm0, %v1283_v16 }
  0xa2   :  { %1288 = vtanh.f32 %v263_v17  ;;  %v241_v19 = vadd.f32 %v225_v14, %v140_v18  ;;  %v184_v20 = vpop.permute.xlu0 %183 }
  0xa3   :  { %v226_v21 = vmul.f32 %v1504_v33, %v184_v20  ;;  %v92_v22 = vpop.permute.xlu1 %91  ;;  %v516_v20 = vld [vmem:[%s1768_s4 + $0x10] sm:$0xff] }
  0xa4   :  { %v1285_v23 = vpop.eup %1284  ;;  %v264_v24 = vadd.f32 %v1513_v40, %v241_v19  ;;  %v141_v25 = vmul.f32 %v1499_v32, %v92_v22 }
  0xa5   :  { %1115 = vmatprep.mubr.msk.f32.mxu0 %vm304_vm0, %v1285_v23  ;;  %v518_v23 = vld [vmem:[%s1768_s4 + $0x20] sm:$0xff] }
  0xa6   :  { %1290 = vtanh.f32 %v264_v24  ;;  %v242_v26 = vadd.f32 %v226_v21, %v141_v25  ;;  %v188_v27 = vpop.permute.xlu0 %187  ;;  %v517_v21 = vld [vmem:[%s1768_s4 + $0x18] sm:$0xff]  ;;  %v519_v24 = vld [vmem:[%s1768_s4 + $0x28] sm:$0xff] }
  0xa7   :  { %v227_v28 = vmul.f32 %v1504_v33, %v188_v27  ;;  %v97_v29 = vpop.permute.xlu1 %96  ;;  %v1233_v22 = vpack.c.bf16 %v517_v21, %v516_v20  ;;  %v1237_v25 = vpack.c.bf16 %v519_v24, %v518_v23  ;;  %v521_v27 = vld [vmem:[%s1768_s4 + $0x38] sm:$0xff]  ;;  %v742_v20 = vld [vmem:[%s1770_s6 + $0x20] sm:$0xff]  ;;  %v743_v21 = vld [vmem:[%s1770_s6 + $0x28] sm:$0xff] }
  0xa8   :  { %v1287_v30 = vpop.eup %1286  ;;  %v265_v31 = vadd.f32 %v1513_v40, %v242_v26  ;;  %v142_v34 = vmul.f32 %v1499_v32, %v97_v29  ;;  %v520_v26 = vld [vmem:[%s1768_s4 + $0x30] sm:$0xff]  ;;  %v1602_v29 = vld [vmem:[%s1769_s3] ss:$0 sm:$0xff]  ;;  %v745_v24 = vld [vmem:[%s1770_s6 + $0x38] sm:$0xff] }
  0xa9   :  { %1116 = vmatmul.mubr.msk.f32.gmra.mrb[4].mxu0 %vm304_vm0, %v1287_v30  ;;  %v744_v23 = vld [vmem:[%s1770_s6 + $0x30] sm:$0xff] }
  0xaa   :  { %1292 = vtanh.f32 %v265_v31  ;;  %v243_v35 = vadd.f32 %v227_v28, %v142_v34  ;;  %v192_v36 = vpop.permute.xlu0 %191  ;;  %v1241_v28 = vpack.c.bf16 %v521_v27, %v520_v26  ;;  %v1663_v26 = vld [vmem:[%s1771_s5] ss:$0 sm:$0xff] }
  0xab   :  { %v228_v37 = vmul.f32 %v1504_v33, %v192_v36  ;;  %v102_v38 = vpop.permute.xlu1 %101 }
  0xac   :  { %v1289_v39 = vpop.eup %1288  ;;  %v266_v41 = vadd.f32 %v1513_v40, %v243_v35  ;;  %v143_v42 = vmul.f32 %v1499_v32, %v102_v38 }
  0xad   :  { %1118 = vmatprep.mubr.msk.f32.mxu0 %vm304_vm0, %v1289_v39 }
  0xae   :  { %1294 = vtanh.f32 %v266_v41  ;;  %v244_v43 = vadd.f32 %v228_v37, %v143_v42  ;;  %v196_v44 = vpop.permute.xlu0 %195 }
  0xaf   :  { %v229_v45 = vmul.f32 %v1504_v33, %v196_v44  ;;  %v107_v46 = vpop.permute.xlu1 %106 }
  0xb0   :  { %v1291_v47 = vpop.eup %1290  ;;  %v267_v48 = vadd.f32 %v1513_v40, %v244_v43  ;;  %v144_v49 = vmul.f32 %v1499_v32, %v107_v46 }
  0xb1   :  { %1119 = vmatmul.mubr.msk.f32.gmra.mrb[6].mxu0 %vm304_vm0, %v1291_v47 }
  0xb2   :  { %1296 = vtanh.f32 %v267_v48  ;;  %v245_v50 = vadd.f32 %v229_v45, %v144_v49  ;;  %v200_v51 = vpop.permute.xlu0 %199 }
  0xb3   :  { %v230_v52 = vmul.f32 %v1504_v33, %v200_v51  ;;  %v112_v53 = vpop.permute.xlu1 %111 }
  0xb4   :  { %v1293_v54 = vpop.eup %1292  ;;  %v268_v55 = vadd.f32 %v1513_v40, %v245_v50  ;;  %v145_v56 = vmul.f32 %v1499_v32, %v112_v53 }
  0xb5   :  { %1121 = vmatprep.mubr.msk.f32.mxu1 %vm304_vm0, %v1293_v54 }
  0xb6   :  { %1298 = vtanh.f32 %v268_v55  ;;  %v246_v57 = vadd.f32 %v230_v52, %v145_v56  ;;  %v204_v58 = vpop.permute.xlu0 %203 }
  0xb7   :  { %v231_v59 = vmul.f32 %v1504_v33, %v204_v58  ;;  %v117_v60 = vpop.permute.xlu1 %116 }
  0xb8   :  { %v1295_v61 = vpop.eup %1294  ;;  %v269_v62 = vadd.f32 %v1513_v40, %v246_v57  ;;  %v146_v63 = vmul.f32 %v1499_v32, %v117_v60 }
  0xb9   :  { %1122 = vmatmul.mubr.msk.f32.vlgmr.msra.gmra.mrb[0].mxu1 %vm304_vm0, %v1295_v61 }
  0xba   :  { %1300 = vtanh.f32 %v269_v62  ;;  %v247_v0 = vadd.f32 %v231_v59, %v146_v63  ;;  %v208_v1 = vpop.permute.xlu0 %207 }
  0xbb   :  { %v232_v2 = vmul.f32 %v1504_v33, %v208_v1  ;;  %v122_v3 = vpop.permute.xlu1 %121 }
  0xbc   :  { %v1297_v4 = vpop.eup %1296  ;;  %v270_v5 = vadd.f32 %v1513_v40, %v247_v0  ;;  %v147_v6 = vmul.f32 %v1499_v32, %v122_v3 }
  0xbd   :  { %1124 = vmatprep.mubr.msk.f32.mxu1 %vm304_vm0, %v1297_v4 }
  0xbe   :  { %1302 = vtanh.f32 %v270_v5  ;;  %v248_v7 = vadd.f32 %v232_v2, %v147_v6  ;;  %v212_v8 = vpop.permute.xlu0 %211 }
  0xbf   :  { %v233_v9 = vmul.f32 %v1504_v33, %v212_v8  ;;  %v127_v10 = vpop.permute.xlu1 %126 }
  0xc0   :  { %v1299_v11 = vpop.eup %1298  ;;  %v271_v12 = vadd.f32 %v1513_v40, %v248_v7  ;;  %v148_v13 = vmul.f32 %v1499_v32, %v127_v10  ;;  %v514_v32 = vld [vmem:[%s1768_s4] sm:$0xff] }
  0xc1   :  { %1125 = vmatmul.mubr.msk.f32.gmra.mrb[2].mxu1 %vm304_vm0, %v1299_v11 }
  0xc2   :  { %1304 = vtanh.f32 %v271_v12  ;;  %v249_v14 = vadd.f32 %v233_v9, %v148_v13 }
  0xc4   :  { %v1301_v15 = vpop.eup %1300  ;;  %v272_v16 = vadd.f32 %v1513_v40, %v249_v14  ;;  %v515_v40 = vld [vmem:[%s1768_s4 + $0x8] sm:$0xff] }
  0xc5   :  { %1127 = vmatprep.mubr.msk.f32.mxu1 %vm304_vm0, %v1301_v15  ;;  %v1229_v19 = vpack.c.bf16 %v515_v40, %v514_v32  ;;  %v740_v32 = vld [vmem:[%s1770_s6 + $0x10] sm:$0xff]  ;;  %v741_v40 = vld [vmem:[%s1770_s6 + $0x18] sm:$0xff] }
  0xc6   :  { %1306 = vtanh.f32 %v272_v16 }
  0xc7   :  { %1230 = vmatprep.subr.bf16.mxu1 %v1229_v19 }
  0xc8   :  { %v1303_v17 = vpop.eup %1302  ;;  %1232 = vmatpush3.bf16.msra.mxu1 %v1229_v19  ;;  %v1249_v19 = vpack.c.bf16 %v741_v40, %v740_v32 }
  0xc9   :  { %1128 = vmatmul.mubr.msk.f32.gmra.mrb[4].mxu1 %vm304_vm0, %v1303_v17  ;;  %1234 = vmatprep.subr.bf16.mxu1 %v1233_v22  ;;  %v738_v17 = vld [vmem:[%s1770_s6] sm:$0xff] }
  0xcc   :  { %v1305_v33 = vpop.eup %1304  ;;  %1236 = vmatpush3.bf16.msra.mxu1 %v1233_v22  ;;  %v1253_v22 = vpack.c.bf16 %v743_v21, %v742_v20 }
  0xcd   :  { %1130 = vmatprep.mubr.msk.f32.mxu1 %vm304_vm0, %v1305_v33  ;;  %1238 = vmatprep.subr.bf16.mxu1 %v1237_v25  ;;  %v739_v33 = vld [vmem:[%s1770_s6 + $0x8] sm:$0xff] }
  0xd0   :  { %v1307_v18 = vpop.eup %1306  ;;  %1240 = vmatpush3.bf16.msra.mxu1 %v1237_v25  ;;  %v1257_v25 = vpack.c.bf16 %v745_v24, %v744_v23 }
  0xd1   :  { %1131 = vmatmul.mubr.msk.f32.gmra.mrb[6].mxu1 %vm304_vm0, %v1307_v18  ;;  %1242 = vmatprep.subr.bf16.mxu1 %v1241_v28  ;;  %v1245_v18 = vpack.c.bf16 %v739_v33, %v738_v17 }
  0xd3   :  { %1246 = vmatprep.subr.bf16.mxu0 %v1245_v18 }
  0xd4   :  { %1244 = vmatpush3.bf16.msra.mxu1 %v1241_v28  ;;  %1248 = vmatpush3.bf16.msra.mxu0 %v1245_v18 }
  0xd5   :  { %1250 = vmatprep.subr.bf16.mxu0 %v1249_v19 }
  0xd8   :  { %1252 = vmatpush3.bf16.msra.mxu0 %v1249_v19 }
  0xd9   :  { %1254 = vmatprep.subr.bf16.mxu0 %v1253_v22 }
  0xdc   :  { %1256 = vmatpush3.bf16.msra.mxu0 %v1253_v22 }
  0xdd   :  { %1258 = vmatprep.subr.bf16.mxu0 %v1257_v25 }
  0xe0   :  { %1260 = vmatpush3.bf16.msra.mxu0 %v1257_v25 }
 0x16d   :  { %v1111_v30 = vpop.f32.mrb[0].mxu0 }
 0x16e   :  { %v425_v31 = vadd.f32 %v1111_v30, %v1602_v29  ;;  %v419_v34 = vpop.f32.mrb[1].mxu0 }
 0x16f   :  { %v420_v35 = vadd.f32 %v1602_v29, %v419_v34 }
 0x171   :  { %1308 = vtanh.f32 %v420_v35 }
 0x172   :  { %1310 = vtanh.f32 %v425_v31 }
 0x174   :  { %v1114_v36 = vpop.f32.mrb[2].mxu0 }
 0x175   :  { %v435_v37 = vadd.f32 %v1114_v36, %v1602_v29  ;;  %v429_v38 = vpop.f32.mrb[3].mxu0 }
 0x176   :  { %v430_v39 = vadd.f32 %v1602_v29, %v429_v38 }
 0x178   :  { %1312 = vtanh.f32 %v430_v39 }
 0x179   :  { %1314 = vtanh.f32 %v435_v37 }
 0x17b   :  { %v1309_v41 = vpop.eup %1308 }
 0x17c   :  { %v1311_v42 = vpop.eup %1310  ;;  %1149 = vmatprep.mubr.msk.f32.mxu1 %vm304_vm0, %v1309_v41  ;;  %v1117_v43 = vpop.f32.mrb[4].mxu0 }
 0x17d   :  { %v445_v44 = vadd.f32 %v1117_v43, %v1602_v29  ;;  %1150 = vmatmul.mubr.msk.f32.vlgmr.msra.gmra.mrb[8].mxu1 %vm304_vm0, %v1311_v42  ;;  %v439_v45 = vpop.f32.mrb[5].mxu0 }
 0x17e   :  { %v440_v46 = vadd.f32 %v1602_v29, %v439_v45 }
 0x180   :  { %1316 = vtanh.f32 %v440_v46 }
 0x181   :  { %1318 = vtanh.f32 %v445_v44 }
 0x182   :  { %v1313_v47 = vpop.eup %1312 }
 0x183   :  { %v1315_v48 = vpop.eup %1314  ;;  %1152 = vmatprep.mubr.msk.f32.mxu1 %vm304_vm0, %v1313_v47 }
 0x184   :  { %v1120_v49 = vpop.f32.mrb[6].mxu0  ;;  %1153 = vmatmul.mubr.msk.f32.gmra.mrb[10].mxu1 %vm304_vm0, %v1315_v48 }
 0x185   :  { %v455_v50 = vadd.f32 %v1120_v49, %v1602_v29  ;;  %v449_v51 = vpop.f32.mrb[7].mxu0 }
 0x186   :  { %v450_v52 = vadd.f32 %v1602_v29, %v449_v51 }
 0x188   :  { %1320 = vtanh.f32 %v450_v52 }
 0x189   :  { %1322 = vtanh.f32 %v455_v50 }
 0x18a   :  { %v1317_v53 = vpop.eup %1316 }
 0x18b   :  { %v1319_v54 = vpop.eup %1318  ;;  %1155 = vmatprep.mubr.msk.f32.mxu1 %vm304_vm0, %v1317_v53 }
 0x18c   :  { %v1123_v55 = vpop.f32.mrb[0].mxu1  ;;  %1156 = vmatmul.mubr.msk.f32.gmra.mrb[12].mxu1 %vm304_vm0, %v1319_v54 }
 0x18d   :  { %v465_v56 = vadd.f32 %v1123_v55, %v1602_v29  ;;  %v459_v57 = vpop.f32.mrb[1].mxu1 }
 0x18e   :  { %v460_v58 = vadd.f32 %v1602_v29, %v459_v57 }
 0x190   :  { %1324 = vtanh.f32 %v460_v58 }
 0x191   :  { %1326 = vtanh.f32 %v465_v56 }
 0x192   :  { %v1321_v59 = vpop.eup %1320 }
 0x193   :  { %v1323_v60 = vpop.eup %1322  ;;  %1158 = vmatprep.mubr.msk.f32.mxu1 %vm304_vm0, %v1321_v59 }
 0x194   :  { %v1126_v61 = vpop.f32.mrb[2].mxu1  ;;  %1159 = vmatmul.mubr.msk.f32.gmra.mrb[14].mxu1 %vm304_vm0, %v1323_v60 }
 0x195   :  { %v475_v62 = vadd.f32 %v1126_v61, %v1602_v29  ;;  %v469_v63 = vpop.f32.mrb[3].mxu1 }
 0x196   :  { %v470_v0 = vadd.f32 %v1602_v29, %v469_v63 }
 0x198   :  { %1328 = vtanh.f32 %v470_v0 }
 0x199   :  { %1330 = vtanh.f32 %v475_v62 }
 0x19a   :  { %v1325_v1 = vpop.eup %1324 }
 0x19b   :  { %v1327_v2 = vpop.eup %1326  ;;  %1161 = vmatprep.mubr.msk.f32.mxu1 %vm304_vm0, %v1325_v1 }
 0x19c   :  { %v1129_v3 = vpop.f32.mrb[4].mxu1  ;;  %1162 = vmatmul.mubr.msk.f32.gmra.mrb[16].mxu1 %vm304_vm0, %v1327_v2 }
 0x19d   :  { %v485_v4 = vadd.f32 %v1129_v3, %v1602_v29  ;;  %v479_v5 = vpop.f32.mrb[5].mxu1 }
 0x19e   :  { %v480_v6 = vadd.f32 %v1602_v29, %v479_v5 }
 0x1a0   :  { %1332 = vtanh.f32 %v480_v6 }
 0x1a1   :  { %1334 = vtanh.f32 %v485_v4 }
 0x1a2   :  { %v1329_v7 = vpop.eup %1328 }
 0x1a3   :  { %v1331_v8 = vpop.eup %1330  ;;  %1164 = vmatprep.mubr.msk.f32.mxu1 %vm304_vm0, %v1329_v7 }
 0x1a4   :  { %v1132_v9 = vpop.f32.mrb[6].mxu1  ;;  %1165 = vmatmul.mubr.msk.f32.gmra.mrb[18].mxu1 %vm304_vm0, %v1331_v8 }
 0x1a5   :  { %v495_v10 = vadd.f32 %v1132_v9, %v1602_v29  ;;  %v489_v11 = vpop.f32.mrb[7].mxu1 }
 0x1a6   :  { %v490_v12 = vadd.f32 %v1602_v29, %v489_v11 }
 0x1a8   :  { %1336 = vtanh.f32 %v490_v12 }
 0x1a9   :  { %1338 = vtanh.f32 %v495_v10 }
 0x1aa   :  { %v1333_v13 = vpop.eup %1332 }
 0x1ab   :  { %v1335_v14 = vpop.eup %1334  ;;  %1167 = vmatprep.mubr.msk.f32.mxu1 %vm304_vm0, %v1333_v13 }
 0x1ac   :  { %1168 = vmatmul.mubr.msk.f32.gmra.mrb[20].mxu1 %vm304_vm0, %v1335_v14  ;;  %v1004_v14 = vld [vmem:[%s1772_s7] ss:$0 sm:$0xff] }
 0x1b2   :  { %v1337_v15 = vpop.eup %1336 }
 0x1b3   :  { %v1339_v16 = vpop.eup %1338  ;;  %1170 = vmatprep.mubr.msk.f32.mxu1 %vm304_vm0, %v1337_v15 }
 0x1b4   :  { %1171 = vmatmul.mubr.msk.f32.gmra.mrb[22].mxu1 %vm304_vm0, %v1339_v16 }
 0x250   :  { %v1151_v27 = vpop.f32.mrb[8].mxu1 }
 0x251   :  { %v649_v28 = vadd.f32 %v1151_v27, %v1663_v26  ;;  %v643_v29 = vpop.f32.mrb[9].mxu1 }
 0x252   :  { %v644_v30 = vadd.f32 %v1663_v26, %v643_v29 }
 0x254   :  { %1340 = vtanh.f32 %v644_v30 }
 0x255   :  { %1342 = vtanh.f32 %v649_v28 }
 0x257   :  { %v1154_v31 = vpop.f32.mrb[10].mxu1 }
 0x258   :  { %v659_v34 = vadd.f32 %v1154_v31, %v1663_v26  ;;  %v653_v35 = vpop.f32.mrb[11].mxu1 }
 0x259   :  { %v654_v36 = vadd.f32 %v1663_v26, %v653_v35 }
 0x25b   :  { %1344 = vtanh.f32 %v654_v36 }
 0x25c   :  { %1346 = vtanh.f32 %v659_v34 }
 0x25e   :  { %v1341_v37 = vpop.eup %1340 }
 0x25f   :  { %v1343_v38 = vpop.eup %1342  ;;  %1189 = vmatprep.mubr.msk.f32.mxu0 %vm304_vm0, %v1341_v37  ;;  %v1157_v39 = vpop.f32.mrb[12].mxu1 }
 0x260   :  { %v669_v41 = vadd.f32 %v1157_v39, %v1663_v26  ;;  %1190 = vmatmul.mubr.msk.f32.vlgmr.msra.gmra.mrb[8].mxu0 %vm304_vm0, %v1343_v38  ;;  %v663_v42 = vpop.f32.mrb[13].mxu1 }
 0x261   :  { %v664_v43 = vadd.f32 %v1663_v26, %v663_v42 }
 0x263   :  { %1348 = vtanh.f32 %v664_v43 }
 0x264   :  { %1350 = vtanh.f32 %v669_v41 }
 0x265   :  { %v1345_v44 = vpop.eup %1344 }
 0x266   :  { %v1347_v45 = vpop.eup %1346  ;;  %1192 = vmatprep.mubr.msk.f32.mxu0 %vm304_vm0, %v1345_v44 }
 0x267   :  { %v1160_v46 = vpop.f32.mrb[14].mxu1  ;;  %1193 = vmatmul.mubr.msk.f32.gmra.mrb[10].mxu0 %vm304_vm0, %v1347_v45 }
 0x268   :  { %v679_v47 = vadd.f32 %v1160_v46, %v1663_v26  ;;  %v673_v48 = vpop.f32.mrb[15].mxu1 }
 0x269   :  { %v674_v49 = vadd.f32 %v1663_v26, %v673_v48 }
 0x26b   :  { %1352 = vtanh.f32 %v674_v49 }
 0x26c   :  { %1354 = vtanh.f32 %v679_v47 }
 0x26d   :  { %v1349_v50 = vpop.eup %1348 }
 0x26e   :  { %v1351_v51 = vpop.eup %1350  ;;  %1195 = vmatprep.mubr.msk.f32.mxu0 %vm304_vm0, %v1349_v50 }
 0x26f   :  { %v1163_v52 = vpop.f32.mrb[16].mxu1  ;;  %1196 = vmatmul.mubr.msk.f32.gmra.mrb[12].mxu0 %vm304_vm0, %v1351_v51 }
 0x270   :  { %v689_v53 = vadd.f32 %v1163_v52, %v1663_v26  ;;  %v683_v54 = vpop.f32.mrb[17].mxu1 }
 0x271   :  { %v684_v55 = vadd.f32 %v1663_v26, %v683_v54 }
 0x273   :  { %1356 = vtanh.f32 %v684_v55 }
 0x274   :  { %1358 = vtanh.f32 %v689_v53 }
 0x275   :  { %v1353_v56 = vpop.eup %1352 }
 0x276   :  { %v1355_v57 = vpop.eup %1354  ;;  %1198 = vmatprep.mubr.msk.f32.mxu0 %vm304_vm0, %v1353_v56 }
 0x277   :  { %v1166_v58 = vpop.f32.mrb[18].mxu1  ;;  %1199 = vmatmul.mubr.msk.f32.gmra.mrb[14].mxu0 %vm304_vm0, %v1355_v57 }
 0x278   :  { %v699_v59 = vadd.f32 %v1166_v58, %v1663_v26  ;;  %v693_v60 = vpop.f32.mrb[19].mxu1 }
 0x279   :  { %v694_v61 = vadd.f32 %v1663_v26, %v693_v60 }
 0x27b   :  { %1360 = vtanh.f32 %v694_v61 }
 0x27c   :  { %1362 = vtanh.f32 %v699_v59 }
 0x27d   :  { %v1357_v62 = vpop.eup %1356 }
 0x27e   :  { %v1359_v63 = vpop.eup %1358  ;;  %1201 = vmatprep.mubr.msk.f32.mxu0 %vm304_vm0, %v1357_v62 }
 0x27f   :  { %v1169_v0 = vpop.f32.mrb[20].mxu1  ;;  %1202 = vmatmul.mubr.msk.f32.gmra.mrb[16].mxu0 %vm304_vm0, %v1359_v63 }
 0x280   :  { %v709_v1 = vadd.f32 %v1169_v0, %v1663_v26  ;;  %v703_v2 = vpop.f32.mrb[21].mxu1 }
 0x281   :  { %v704_v3 = vadd.f32 %v1663_v26, %v703_v2 }
 0x283   :  { %1364 = vtanh.f32 %v704_v3 }
 0x284   :  { %1366 = vtanh.f32 %v709_v1 }
 0x285   :  { %v1361_v4 = vpop.eup %1360 }
 0x286   :  { %v1363_v5 = vpop.eup %1362  ;;  %1204 = vmatprep.mubr.msk.f32.mxu0 %vm304_vm0, %v1361_v4 }
 0x287   :  { %v1172_v6 = vpop.f32.mrb[22].mxu1  ;;  %1205 = vmatmul.mubr.msk.f32.gmra.mrb[18].mxu0 %vm304_vm0, %v1363_v5 }
 0x288   :  { %v719_v7 = vadd.f32 %v1172_v6, %v1663_v26  ;;  %v713_v8 = vpop.f32.mrb[23].mxu1 }
 0x289   :  { %v714_v9 = vadd.f32 %v1663_v26, %v713_v8 }
 0x28b   :  { %1368 = vtanh.f32 %v714_v9 }
 0x28c   :  { %1370 = vtanh.f32 %v719_v7 }
 0x28d   :  { %v1365_v10 = vpop.eup %1364 }
 0x28e   :  { %v1367_v11 = vpop.eup %1366  ;;  %1207 = vmatprep.mubr.msk.f32.mxu0 %vm304_vm0, %v1365_v10 }
 0x28f   :  { %1208 = vmatmul.mubr.msk.f32.gmra.mrb[20].mxu0 %vm304_vm0, %v1367_v11 }
 0x295   :  { %v1369_v12 = vpop.eup %1368 }
 0x296   :  { %v1371_v13 = vpop.eup %1370  ;;  %1210 = vmatprep.mubr.msk.f32.mxu0 %vm304_vm0, %v1369_v12 }
 0x297   :  { %1211 = vmatmul.mubr.msk.f32.gmra.mrb[22].mxu0 %vm304_vm0, %v1371_v13 }
 0x333   :  { %v1191_v15 = vpop.f32.mrb[8].mxu0 }
 0x334   :  { %v873_v16 = vadd.f32 %v1191_v15, %v1004_v14  ;;  %v867_v17 = vpop.f32.mrb[9].mxu0 }
 0x335   :  { %v868_v33 = vadd.f32 %v1004_v14, %v867_v17 }
 0x336   :  { %948 = vst.msk [vmem:[%s1773_s9 + $0x8] sm:$0xff] %vm946_vm1, %v873_v16 }
 0x337   :  { %947 = vst.msk [vmem:[%s1773_s9] sm:$0xff] %vm946_vm1, %v868_v33 }
 0x33a   :  { %v1194_v18 = vpop.f32.mrb[10].mxu0 }
 0x33b   :  { %v883_v32 = vadd.f32 %v1194_v18, %v1004_v14  ;;  %v877_v40 = vpop.f32.mrb[11].mxu0 }
 0x33c   :  { %v878_v19 = vadd.f32 %v1004_v14, %v877_v40 }
 0x33d   :  { %950 = vst.msk [vmem:[%s1773_s9 + $0x18] sm:$0xff] %vm946_vm1, %v883_v32 }
 0x33e   :  { %949 = vst.msk [vmem:[%s1773_s9 + $0x10] sm:$0xff] %vm946_vm1, %v878_v19 }
 0x342   :  { %v1197_v20 = vpop.f32.mrb[12].mxu0 }
 0x343   :  { %v893_v21 = vadd.f32 %v1197_v20, %v1004_v14  ;;  %v887_v22 = vpop.f32.mrb[13].mxu0 }
 0x344   :  { %v888_v23 = vadd.f32 %v1004_v14, %v887_v22 }
 0x345   :  { %952 = vst.msk [vmem:[%s1773_s9 + $0x28] sm:$0xff] %vm946_vm1, %v893_v21 }
 0x346   :  { %951 = vst.msk [vmem:[%s1773_s9 + $0x20] sm:$0xff] %vm946_vm1, %v888_v23 }
 0x34a   :  { %v1200_v24 = vpop.f32.mrb[14].mxu0 }
 0x34b   :  { %v903_v25 = vadd.f32 %v1200_v24, %v1004_v14  ;;  %v897_v26 = vpop.f32.mrb[15].mxu0 }
 0x34c   :  { %v898_v27 = vadd.f32 %v1004_v14, %v897_v26 }
 0x34d   :  { %954 = vst.msk [vmem:[%s1773_s9 + $0x38] sm:$0xff] %vm946_vm1, %v903_v25 }
 0x34e   :  { %953 = vst.msk [vmem:[%s1773_s9 + $0x30] sm:$0xff] %vm946_vm1, %v898_v27 }
 0x352   :  { %v1203_v28 = vpop.f32.mrb[16].mxu0 }
 0x353   :  { %v913_v29 = vadd.f32 %v1203_v28, %v1004_v14  ;;  %v907_v30 = vpop.f32.mrb[17].mxu0 }
 0x354   :  { %v908_v31 = vadd.f32 %v1004_v14, %v907_v30 }
 0x355   :  { %956 = vst.msk [vmem:[%s1773_s9 + $0x48] sm:$0xff] %vm946_vm1, %v913_v29 }
 0x356   :  { %955 = vst.msk [vmem:[%s1773_s9 + $0x40] sm:$0xff] %vm946_vm1, %v908_v31 }
 0x35a   :  { %v1206_v34 = vpop.f32.mrb[18].mxu0 }
 0x35b   :  { %v923_v35 = vadd.f32 %v1206_v34, %v1004_v14  ;;  %v917_v36 = vpop.f32.mrb[19].mxu0 }
 0x35c   :  { %v918_v37 = vadd.f32 %v1004_v14, %v917_v36 }
 0x35d   :  { %958 = vst.msk [vmem:[%s1773_s9 + $0x58] sm:$0xff] %vm946_vm1, %v923_v35 }
 0x35e   :  { %957 = vst.msk [vmem:[%s1773_s9 + $0x50] sm:$0xff] %vm946_vm1, %v918_v37 }
 0x362   :  { %v1209_v38 = vpop.f32.mrb[20].mxu0 }
 0x363   :  { %v933_v39 = vadd.f32 %v1209_v38, %v1004_v14  ;;  %v927_v41 = vpop.f32.mrb[21].mxu0 }
 0x364   :  { %v928_v42 = vadd.f32 %v1004_v14, %v927_v41 }
 0x365   :  { %960 = vst.msk [vmem:[%s1773_s9 + $0x68] sm:$0xff] %vm946_vm1, %v933_v39 }
 0x366   :  { %959 = vst.msk [vmem:[%s1773_s9 + $0x60] sm:$0xff] %vm946_vm1, %v928_v42 }
 0x36a   :  { %v1212_v43 = vpop.f32.mrb[22].mxu0 }
 0x36b   :  { %v943_v44 = vadd.f32 %v1212_v43, %v1004_v14  ;;  %v937_v45 = vpop.f32.mrb[23].mxu0 }
 0x36c   :  { %v938_v46 = vadd.f32 %v1004_v14, %v937_v45 }
 0x36d   :  { %962 = vst.msk [vmem:[%s1773_s9 + $0x78] sm:$0xff] %vm946_vm1, %v943_v44 }
 0x36e   :  { %961 = vst.msk [vmem:[%s1773_s9 + $0x70] sm:$0xff] %vm946_vm1, %v938_v46 }

</bundles_post_ra>
